<compile_context>
chip_gen: v6e
topology: v6e:2x2x1
jax: 0.10.0
libtpu: 0.0.40
codegen_flags: <defaults>
</compile_context>

<pallas_src>
import jax
import jax.numpy as jnp
from jax.experimental import pallas as pl
from jax.experimental.pallas import tpu as pltpu

LANE = 128      # lane width (last dim granularity)
SUBLANE = 8     # sublane granularity (second-to-last dim)


def _round_up(n, m):
    return -(-n // m) * m


# ----------------------------- kernels ------------------------------------ #

def _resblock_kernel_id(x_ref, w1_ref, b1_ref, w2_ref, b2_ref, o_ref):
    """Identity shortcut: relu(x + (W2 relu(W1 x + b1) + b2)) for one batch tile."""
    x = x_ref[...]                                  # f32 (tile_b, in_p)
    xb = x.astype(jnp.bfloat16)                     # bf16 into the MXU
    h = jnp.dot(xb, w1_ref[...], preferred_element_type=jnp.float32) + b1_ref[...]
    h = jnp.maximum(h, 0.0)                         # f32 elementwise (v5e-safe)
    mlp = jnp.dot(h.astype(jnp.bfloat16), w2_ref[...],
                  preferred_element_type=jnp.float32) + b2_ref[...]
    o_ref[...] = jnp.maximum(x + mlp, 0.0).astype(o_ref.dtype)


def _resblock_kernel_proj(x_ref, wcat_ref, bcat_ref, w2_ref, b2_ref, o_ref):
    """Linear shortcut. wcat = [W1 | Ws] so x goes through the MXU once (N = 2*p_p)."""
    xb = x_ref[...].astype(jnp.bfloat16)
    z = jnp.dot(xb, wcat_ref[...], preferred_element_type=jnp.float32) + bcat_ref[...]
    p_pad = w2_ref.shape[0]                         # padded `planes` (multiple of 128)
    h = jnp.maximum(z[:, :p_pad], 0.0)              # mlp first-layer activation (lane-aligned slice)
    sc = z[:, p_pad:]                               # shortcut branch
    mlp = jnp.dot(h.astype(jnp.bfloat16), w2_ref[...],
                  preferred_element_type=jnp.float32) + b2_ref[...]
    o_ref[...] = jnp.maximum(sc + mlp, 0.0).astype(o_ref.dtype)


# --------------------------- param handling -------------------------------- #

def init_params(key, in_planes, planes):
    """Deterministic init mimicking nn.Linear default (PyTorch (out,in) layout), f32."""
    ks = jax.random.split(key, 6)

    def lin(kw, kb, fan_in, fan_out):
        bound = 1.0 / jnp.sqrt(fan_in)
        w = jax.random.uniform(kw, (fan_out, fan_in), jnp.float32, -bound, bound)
        b = jax.random.uniform(kb, (fan_out,), jnp.float32, -bound, bound)
        return w, b

    w1, b1 = lin(ks[0], ks[1], in_planes, planes)
    w2, b2 = lin(ks[2], ks[3], planes, planes)
    params = {"w1": w1, "b1": b1, "w2": w2, "b2": b2}
    if in_planes != planes:
        ws, bs = lin(ks[4], ks[5], in_planes, planes)
        params["ws"], params["bs"] = ws, bs
    else:
        params["ws"], params["bs"] = None, None
    return params


def prepare_params(params, in_planes, planes):
    """One-time prep: transpose to (in, out), zero-pad features to lane multiples,
    store weights as bf16 (MXU inputs) and biases as f32, fuse first-layer +
    shortcut weights for the projection path.

    NOTE: for genuinely tiny feature widths (e.g. 16/32) padding each block to
    128 lanes in isolation is zero-dominated; pack several feature groups /
    stacked blocks into one 128-lane slab at the call site if that matters."""
    in_p = _round_up(in_planes, LANE)
    p_p = _round_up(planes, LANE)

    def pad_w(w_t, rows, cols):
        w_t = jnp.pad(w_t, ((0, rows - w_t.shape[0]), (0, cols - w_t.shape[1])))
        return w_t.astype(jnp.bfloat16)

    def pad_b(b):
        return jnp.pad(b, (0, p_p - planes)).reshape(1, p_p).astype(jnp.float32)

    w1_t = pad_w(params["w1"].T, in_p, p_p)          # (in_p, p_p)   bf16
    w2_t = pad_w(params["w2"].T, p_p, p_p)           # (p_p,  p_p)   bf16
    b1 = pad_b(params["b1"])                         # (1, p_p)      f32
    b2 = pad_b(params["b2"])

    prepped = {
        "in_planes": in_planes, "planes": planes,
        "in_pad": in_p, "planes_pad": p_p,
        "w2": w2_t, "b2": b2,
    }
    if params.get("ws") is None:
        prepped["identity"] = True
        prepped["w1"] = w1_t
        prepped["b1"] = b1
    else:
        ws_t = pad_w(params["ws"].T, in_p, p_p)
        bs = pad_b(params["bs"])
        prepped["identity"] = False
        prepped["wcat"] = jnp.concatenate([w1_t, ws_t], axis=1)   # (in_p, 2*p_p) bf16
        prepped["bcat"] = jnp.concatenate([b1, bs], axis=1)       # (1,    2*p_p) f32
    return prepped


# --------------------------- VMEM budgeting --------------------------------- #

def _vmem_capacity_bytes():
    """Per-core VMEM capacity; conservative (v7x, 64 MiB) fallback."""
    try:
        info = pltpu.get_tpu_info()
        cap = int(getattr(info, "vmem_capacity_bytes", 0) or 0)
        if cap > 0:
            return cap
    except Exception:
        pass
    return 64 << 20


def _tile_vmem_bytes(tile_b, in_p, p_p, proj):
    """Approximate per-tile footprint: double-buffered f32 x/out tiles plus
    in-kernel f32 intermediates (z is 2*p_p wide on the projection path) and
    bf16 casts of x / h."""
    io = 2 * 4 * tile_b * (in_p + p_p)                    # pipelined x + out
    n1 = (2 * p_p) if proj else p_p
    scratch = 4 * tile_b * (n1 + 3 * p_p) + 2 * tile_b * (in_p + p_p)
    return io + scratch


# ------------------------------ forward ------------------------------------ #

def resblock1d_forward(x, prepped, *, max_tile_b=1024):
    """x: (batch, in_planes) float32.  prepped: output of prepare_params()."""
    batch, in_planes = x.shape
    assert in_planes == prepped["in_planes"]
    planes = prepped["planes"]
    in_p, p_p = prepped["in_pad"], prepped["planes_pad"]
    proj = not prepped["identity"]

    if proj:
        weights = (prepped["wcat"], prepped["bcat"], prepped["w2"], prepped["b2"])
        kernel = _resblock_kernel_proj
    else:
        weights = (prepped["w1"], prepped["b1"], prepped["w2"], prepped["b2"])
        kernel = _resblock_kernel_id

    weight_bytes = sum(int(a.size) * a.dtype.itemsize for a in weights)

    vmem_cap = _vmem_capacity_bytes()
    vmem_budget = int(0.75 * vmem_cap)

    # Batch tile: biggest multiple of 8 (<= max_tile_b) whose pipelined footprint
    # fits the per-generation VMEM budget alongside the resident weights.
    tile_b = min(_round_up(batch, SUBLANE), _round_up(max_tile_b, SUBLANE))
    while tile_b > SUBLANE and weight_bytes + _tile_vmem_bytes(tile_b, in_p, p_p, proj) > vmem_budget:
        tile_b = max(SUBLANE, _round_up(tile_b // 2, SUBLANE))
    # Avoid a mostly-empty trailing tile (keeps wasted compute bounded).
    while tile_b > 128 and (_round_up(batch, tile_b) - batch) * 2 > tile_b:
        tile_b = max(128, _round_up(tile_b // 2, SUBLANE))
    # TODO(synk): add a feature-tiled (K/N grid axis + f32 accumulator) fallback for
    # very large `planes` where resident weights alone exceed VMEM (hits v7x first).

    b_pad = _round_up(batch, tile_b)
    grid = (b_pad // tile_b,)
    if b_pad != batch or in_p != in_planes:
        x = jnp.pad(x, ((0, b_pad - batch), (0, in_p - in_planes)))

    x_spec = pl.BlockSpec((tile_b, in_p), lambda i: (i, 0))
    out_spec = pl.BlockSpec((tile_b, p_p), lambda i: (i, 0))

    vmem_limit = int(min(
        vmem_budget,
        max(weight_bytes + _tile_vmem_bytes(tile_b, in_p, p_p, proj) + (8 << 20), 16 << 20),
    ))

    n1 = (2 * p_p) if proj else p_p
    cost = pl.CostEstimate(
        flops=2 * b_pad * (in_p * n1 + p_p * p_p),
        transcendentals=0,
        bytes_accessed=4 * b_pad * (in_p + p_p) + weight_bytes,
    )

    def build_and_run(single_buffer_weights):
        def resident(arr):
            # Full-array block, constant index_map -> stays in VMEM across the grid.
            if single_buffer_weights:
                return pl.BlockSpec(arr.shape, lambda i: (0, 0),
                                    pipeline_mode=pl.Buffered(1))
            return pl.BlockSpec(arr.shape, lambda i: (0, 0))

        in_specs = [x_spec] + [resident(a) for a in weights]
        return pl.pallas_call(
            kernel,
            grid=grid,
            in_specs=in_specs,
            out_specs=out_spec,
            out_shape=jax.ShapeDtypeStruct((b_pad, p_p), jnp.float32),
            compiler_params=pltpu.CompilerParams(
                # On v7x, pltpu.CORE_PARALLEL here would shard the batch grid across
                # both TensorCores; plain "parallel" is the portable default.
                dimension_semantics=("parallel",),
                vmem_limit_bytes=vmem_limit,
            ),
            cost_estimate=cost,
        )(x, *weights)

    try:
        out = build_and_run(True)
    except Exception:
        # Fallback if this jax/libtpu version rejects pipeline_mode=Buffered(1).
        out = build_and_run(False)

    # Strip batch / lane padding.
    return out[:batch, :planes]


# ----------------------------- reference ----------------------------------- #

def reference_forward(x, params):
    """Pure-JAX f32 reference mirroring the PyTorch module."""
    h = jnp.maximum(x @ params["w1"].T + params["b1"], 0.0)
    mlp = h @ params["w2"].T + params["b2"]
    sc = x if params["ws"] is None else x @ params["ws"].T + params["bs"]
    return jnp.maximum(sc + mlp, 0.0)


if __name__ == "__main__":
    key = jax.random.PRNGKey(0)
    k_x, k_p = jax.random.split(key)

    # bf16 MXU inputs vs f32 reference -> loosened tolerances.
    TOL = dict(atol=2e-2, rtol=2e-2)

    # Projection-shortcut path (in_planes != planes), small shapes.
    batch, in_planes, planes = 8, 16, 32
    x = jax.random.normal(k_x, (batch, in_planes), jnp.float32)
    params = init_params(k_p, in_planes, planes)
    prepped = prepare_params(params, in_planes, planes)

    out = jax.block_until_ready(resblock1d_forward(x, prepped))
    ref = reference_forward(x, params)
    assert out.shape == (batch, planes)
    assert jnp.allclose(out, ref, **TOL), "projection-path mismatch"

    # Identity-shortcut path (in_planes == planes).
    params_id = init_params(k_p, planes, planes)
    prepped_id = prepare_params(params_id, planes, planes)
    x2 = jax.random.normal(k_x, (batch, planes), jnp.float32)
    out2 = jax.block_until_ready(resblock1d_forward(x2, prepped_id))
    ref2 = reference_forward(x2, params_id)
    assert jnp.allclose(out2, ref2, **TOL), "identity-path mismatch"

    # Larger, non-multiple batch: exercises the multi-tile pipelined grid + padding.
    batch3 = 1041
    x3 = jax.random.normal(k_x, (batch3, in_planes), jnp.float32)
    out3 = jax.block_until_ready(resblock1d_forward(x3, prepped))
    ref3 = reference_forward(x3, params)
    assert out3.shape == (batch3, planes)
    assert jnp.allclose(out3, ref3, **TOL), "tiled-batch mismatch"

    print("KERNEL_OK")
</pallas_src>

<mosaic_0001>
module attributes {stable_mosaic.version = 11 : i64} {
  func.func @_resblock_kernel_proj(%arg0: i32, %arg1: memref<8x128xf32, #tpu.memory_space<vmem>>, %arg2: memref<128x256xbf16, #tpu.memory_space<vmem>>, %arg3: memref<1x256xf32, #tpu.memory_space<vmem>>, %arg4: memref<128x128xbf16, #tpu.memory_space<vmem>>, %arg5: memref<1x128xf32, #tpu.memory_space<vmem>>, %arg6: memref<8x128xf32, #tpu.memory_space<vmem>>) attributes {dimension_semantics = [#tpu.dimension_semantics<parallel>], iteration_bounds = array<i64: 1>, scalar_prefetch = 0 : i64, scratch_operands = 0 : i64, tpu.core_type = #tpu.core_type<tc>, window_params = [{transform_indices = @transform_0, window_bounds = array<i64: 8, 128>}, {pipeline_mode = #tpu.pipeline_mode<synchronous>, transform_indices = @transform_1, window_bounds = array<i64: 128, 256>}, {pipeline_mode = #tpu.pipeline_mode<synchronous>, transform_indices = @transform_2, window_bounds = array<i64: 1, 256>}, {pipeline_mode = #tpu.pipeline_mode<synchronous>, transform_indices = @transform_3, window_bounds = array<i64: 128, 128>}, {pipeline_mode = #tpu.pipeline_mode<synchronous>, transform_indices = @transform_4, window_bounds = array<i64: 1, 128>}, {transform_indices = @transform_5, window_bounds = array<i64: 8, 128>}]} {
    %c0 = arith.constant 0 : index
    %c0_0 = arith.constant 0 : index
    %0 = vector.load %arg1[%c0, %c0_0] : memref<8x128xf32, #tpu.memory_space<vmem>>, vector<8x128xf32>
    %1 = arith.truncf %0 : vector<8x128xf32> to vector<8x128xbf16>
    %c0_1 = arith.constant 0 : index
    %c0_2 = arith.constant 0 : index
    %2 = vector.load %arg2[%c0_1, %c0_2] : memref<128x256xbf16, #tpu.memory_space<vmem>>, vector<128x256xbf16>
    %cst = arith.constant dense<0.000000e+00> : vector<8x256xf32>
    %3 = tpu.matmul %1, %2, %cst {dimension_numbers = #tpu.dot_dimension_numbers<[1], [0], [0], [1], [0, 0, 1, 1], [], []>} : vector<8x128xbf16>, vector<128x256xbf16>, vector<8x256xf32> -> vector<8x256xf32>
    %c0_3 = arith.constant 0 : index
    %c0_4 = arith.constant 0 : index
    %4 = vector.load %arg3[%c0_3, %c0_4] : memref<1x256xf32, #tpu.memory_space<vmem>>, vector<1x256xf32>
    %5 = vector.broadcast %4 : vector<1x256xf32> to vector<8x256xf32>
    %6 = arith.addf %3, %5 : vector<8x256xf32>
    %7 = vector.extract_strided_slice %6 {offsets = [0, 0], sizes = [8, 128], strides = [1, 1]} : vector<8x256xf32> to vector<8x128xf32>
    %cst_5 = arith.constant 0.000000e+00 : f32
    %8 = vector.broadcast %cst_5 : f32 to vector<8x128xf32>
    %9 = arith.maximumf %7, %8 : vector<8x128xf32>
    %10 = vector.extract_strided_slice %6 {offsets = [0, 128], sizes = [8, 128], strides = [1, 1]} : vector<8x256xf32> to vector<8x128xf32>
    %11 = arith.truncf %9 : vector<8x128xf32> to vector<8x128xbf16>
    %c0_6 = arith.constant 0 : index
    %c0_7 = arith.constant 0 : index
    %12 = vector.load %arg4[%c0_6, %c0_7] : memref<128x128xbf16, #tpu.memory_space<vmem>>, vector<128x128xbf16>
    %cst_8 = arith.constant dense<0.000000e+00> : vector<8x128xf32>
    %13 = tpu.matmul %11, %12, %cst_8 {dimension_numbers = #tpu.dot_dimension_numbers<[1], [0], [0], [1], [0, 0, 1, 1], [], []>} : vector<8x128xbf16>, vector<128x128xbf16>, vector<8x128xf32> -> vector<8x128xf32>
    %c0_9 = arith.constant 0 : index
    %c0_10 = arith.constant 0 : index
    %14 = vector.load %arg5[%c0_9, %c0_10] : memref<1x128xf32, #tpu.memory_space<vmem>>, vector<1x128xf32>
    %15 = vector.broadcast %14 : vector<1x128xf32> to vector<8x128xf32>
    %16 = arith.addf %13, %15 : vector<8x128xf32>
    %17 = arith.addf %10, %16 : vector<8x128xf32>
    %cst_11 = arith.constant 0.000000e+00 : f32
    %18 = vector.broadcast %cst_11 : f32 to vector<8x128xf32>
    %19 = arith.maximumf %17, %18 : vector<8x128xf32>
    %c0_12 = arith.constant 0 : index
    %c0_13 = arith.constant 0 : index
    %20 = vector.load %arg6[%c0_12, %c0_13] : memref<8x128xf32, #tpu.memory_space<vmem>>, vector<8x128xf32>
    tpu.vector_store %arg6[%c0_12, %c0_13], %19 {strides = array<i32>} : memref<8x128xf32, #tpu.memory_space<vmem>>, vector<8x128xf32>,
    return
  }
  func.func @transform_0(%arg0: i32) -> (i32, i32) {
    %c0_i32 = arith.constant 0 : i32
    %c0_i32_0 = arith.constant 0 : i32
    return %arg0, %c0_i32 : i32, i32
  }
  func.func @transform_1(%arg0: i32) -> (i32, i32) {
    %c0_i32 = arith.constant 0 : i32
    %c0_i32_0 = arith.constant 0 : i32
    %c0_i32_1 = arith.constant 0 : i32
    return %c0_i32, %c0_i32_0 : i32, i32
  }
  func.func @transform_2(%arg0: i32) -> (i32, i32) {
    %c0_i32 = arith.constant 0 : i32
    %c0_i32_0 = arith.constant 0 : i32
    %c0_i32_1 = arith.constant 0 : i32
    return %c0_i32, %c0_i32_0 : i32, i32
  }
  func.func @transform_3(%arg0: i32) -> (i32, i32) {
    %c0_i32 = arith.constant 0 : i32
    %c0_i32_0 = arith.constant 0 : i32
    %c0_i32_1 = arith.constant 0 : i32
    return %c0_i32, %c0_i32_0 : i32, i32
  }
  func.func @transform_4(%arg0: i32) -> (i32, i32) {
    %c0_i32 = arith.constant 0 : i32
    %c0_i32_0 = arith.constant 0 : i32
    %c0_i32_1 = arith.constant 0 : i32
    return %c0_i32, %c0_i32_0 : i32, i32
  }
  func.func @transform_5(%arg0: i32) -> (i32, i32) {
    %c0_i32 = arith.constant 0 : i32
    %c0_i32_0 = arith.constant 0 : i32
    return %arg0, %c0_i32 : i32, i32
  }
}

module attributes {stable_mosaic.version = 11 : i64} {
  func.func @_resblock_kernel_proj(%arg0: i32, %arg1: memref<8x128xf32, #tpu.memory_space<vmem>>, %arg2: memref<128x256xbf16, #tpu.memory_space<vmem>>, %arg3: memref<1x256xf32, #tpu.memory_space<vmem>>, %arg4: memref<128x128xbf16, #tpu.memory_space<vmem>>, %arg5: memref<1x128xf32, #tpu.memory_space<vmem>>, %arg6: memref<8x128xf32, #tpu.memory_space<vmem>>) attributes {dimension_semantics = [#tpu.dimension_semantics<parallel>], iteration_bounds = array<i64: 1>, scalar_prefetch = 0 : i64, scratch_operands = 0 : i64, tpu.core_type = #tpu.core_type<tc>, window_params = [{transform_indices = @transform_0, window_bounds = array<i64: 8, 128>}, {pipeline_mode = #tpu.pipeline_mode<synchronous>, transform_indices = @transform_1, window_bounds = array<i64: 128, 256>}, {pipeline_mode = #tpu.pipeline_mode<synchronous>, transform_indices = @transform_2, window_bounds = array<i64: 1, 256>}, {pipeline_mode = #tpu.pipeline_mode<synchronous>, transform_indices = @transform_3, window_bounds = array<i64: 128, 128>}, {pipeline_mode = #tpu.pipeline_mode<synchronous>, transform_indices = @transform_4, window_bounds = array<i64: 1, 128>}, {transform_indices = @transform_5, window_bounds = array<i64: 8, 128>}]} {
    %c0 = arith.constant 0 : index
    %c0_0 = arith.constant 0 : index
    %0 = vector.load %arg1[%c0, %c0_0] : memref<8x128xf32, #tpu.memory_space<vmem>>, vector<8x128xf32>
    %1 = arith.truncf %0 : vector<8x128xf32> to vector<8x128xbf16>
    %c0_1 = arith.constant 0 : index
    %c0_2 = arith.constant 0 : index
    %2 = vector.load %arg2[%c0_1, %c0_2] : memref<128x256xbf16, #tpu.memory_space<vmem>>, vector<128x256xbf16>
    %cst = arith.constant dense<0.000000e+00> : vector<8x256xf32>
    %3 = tpu.matmul %1, %2, %cst {dimension_numbers = #tpu.dot_dimension_numbers<[1], [0], [0], [1], [0, 0, 1, 1], [], []>} : vector<8x128xbf16>, vector<128x256xbf16>, vector<8x256xf32> -> vector<8x256xf32>
    %c0_3 = arith.constant 0 : index
    %c0_4 = arith.constant 0 : index
    %4 = vector.load %arg3[%c0_3, %c0_4] : memref<1x256xf32, #tpu.memory_space<vmem>>, vector<1x256xf32>
    %5 = vector.broadcast %4 : vector<1x256xf32> to vector<8x256xf32>
    %6 = arith.addf %3, %5 : vector<8x256xf32>
    %7 = vector.extract_strided_slice %6 {offsets = [0, 0], sizes = [8, 128], strides = [1, 1]} : vector<8x256xf32> to vector<8x128xf32>
    %cst_5 = arith.constant 0.000000e+00 : f32
    %8 = vector.broadcast %cst_5 : f32 to vector<8x128xf32>
    %9 = arith.maximumf %7, %8 : vector<8x128xf32>
    %10 = vector.extract_strided_slice %6 {offsets = [0, 128], sizes = [8, 128], strides = [1, 1]} : vector<8x256xf32> to vector<8x128xf32>
    %11 = arith.truncf %9 : vector<8x128xf32> to vector<8x128xbf16>
    %c0_6 = arith.constant 0 : index
    %c0_7 = arith.constant 0 : index
    %12 = vector.load %arg4[%c0_6, %c0_7] : memref<128x128xbf16, #tpu.memory_space<vmem>>, vector<128x128xbf16>
    %cst_8 = arith.constant dense<0.000000e+00> : vector<8x128xf32>
    %13 = tpu.matmul %11, %12, %cst_8 {dimension_numbers = #tpu.dot_dimension_numbers<[1], [0], [0], [1], [0, 0, 1, 1], [], []>} : vector<8x128xbf16>, vector<128x128xbf16>, vector<8x128xf32> -> vector<8x128xf32>
    %c0_9 = arith.constant 0 : index
    %c0_10 = arith.constant 0 : index
    %14 = vector.load %arg5[%c0_9, %c0_10] : memref<1x128xf32, #tpu.memory_space<vmem>>, vector<1x128xf32>
    %15 = vector.broadcast %14 : vector<1x128xf32> to vector<8x128xf32>
    %16 = arith.addf %13, %15 : vector<8x128xf32>
    %17 = arith.addf %10, %16 : vector<8x128xf32>
    %cst_11 = arith.constant 0.000000e+00 : f32
    %18 = vector.broadcast %cst_11 : f32 to vector<8x128xf32>
    %19 = arith.maximumf %17, %18 : vector<8x128xf32>
    %c0_12 = arith.constant 0 : index
    %c0_13 = arith.constant 0 : index
    %20 = vector.load %arg6[%c0_12, %c0_13] : memref<8x128xf32, #tpu.memory_space<vmem>>, vector<8x128xf32>
    tpu.vector_store %arg6[%c0_12, %c0_13], %19 {strides = array<i32>} : memref<8x128xf32, #tpu.memory_space<vmem>>, vector<8x128xf32>,
    return
  }
  func.func @transform_0(%arg0: i32) -> (i32, i32) {
    %c0_i32 = arith.constant 0 : i32
    %c0_i32_0 = arith.constant 0 : i32
    return %arg0, %c0_i32 : i32, i32
  }
  func.func @transform_1(%arg0: i32) -> (i32, i32) {
    %c0_i32 = arith.constant 0 : i32
    %c0_i32_0 = arith.constant 0 : i32
    %c0_i32_1 = arith.constant 0 : i32
    return %c0_i32, %c0_i32_0 : i32, i32
  }
  func.func @transform_2(%arg0: i32) -> (i32, i32) {
    %c0_i32 = arith.constant 0 : i32
    %c0_i32_0 = arith.constant 0 : i32
    %c0_i32_1 = arith.constant 0 : i32
    return %c0_i32, %c0_i32_0 : i32, i32
  }
  func.func @transform_3(%arg0: i32) -> (i32, i32) {
    %c0_i32 = arith.constant 0 : i32
    %c0_i32_0 = arith.constant 0 : i32
    %c0_i32_1 = arith.constant 0 : i32
    return %c0_i32, %c0_i32_0 : i32, i32
  }
  func.func @transform_4(%arg0: i32) -> (i32, i32) {
    %c0_i32 = arith.constant 0 : i32
    %c0_i32_0 = arith.constant 0 : i32
    %c0_i32_1 = arith.constant 0 : i32
    return %c0_i32, %c0_i32_0 : i32, i32
  }
  func.func @transform_5(%arg0: i32) -> (i32, i32) {
    %c0_i32 = arith.constant 0 : i32
    %c0_i32_0 = arith.constant 0 : i32
    return %arg0, %c0_i32 : i32, i32
  }
}

</mosaic_0001>

<bundles_post_ra>
// kernel: tpu_custom_call.1
= control target key start
LH: loop header
LB: loop body
LE: loop exit
PB: predicated region body
PF: predicated region fallthrough
CT: control target
= control target key end

     0   :  { %10 = vsyncpa [#allocation3], 0  ;;  %s586_s0 = inlined_call_operand.hbm [shape: f32[8,128], index: 0, kind: input, shape index: {}]   ;;  %s587_s1 = inlined_call_operand.hbm [shape: bf16[128,256], index: 1, kind: input, shape index: {}]   ;;  %s588_s2 = inlined_call_operand.vmem [shape: f32[1,256], index: 2, kind: input, shape index: {}]   ;;  %s589_s3 = inlined_call_operand.hbm [shape: bf16[128,128], index: 3, kind: input, shape index: {}]   ;;  %s590_s4 = inlined_call_operand.vmem [shape: f32[1,128], index: 4, kind: input, shape index: {}]   ;;  %s591_s5 = inlined_call_operand.hbm [shape: f32[8,128], index: 5, kind: output, shape index: {}]  }
   0x1   :  { %11 = vsyncpa [#allocation6], 0 }
   0x2   :  { %12 = vsyncpa [#allocation4], 0  ;;  %s527_s18 = smov [#allocation5]  }
   0x3   :  { %s28_s19 = sshll.u32 %s527_s18, 4  ;;  %s29_s19 = int_to_ptr.vmem [resolvable:$true] %s28_s19 }
   0x4   :  { %s449_s20 = scalar_lea.vmem %s29_s19, 2048  ;;  %p454_p1 = scmp.lt.s32.totalorder %s29_s19, %s29_s19 }
   0x5   :  { %p450_p0 = scmp.ne.s32.totalorder %s29_s19, %s449_s20  ;;  %p455_p2 = scmp.lt.s32.totalorder %s449_s20, %s449_s20 }
   0x7   :  { %p456_p3 = por %p455_p2, %p454_p1 }
   0x9   :  { %p457_p4 = pnand %p456_p3, %p450_p0 }
   0xb   :  { %460 = shalt.err (!%p457_p4)
}
   0xc   :  { %s528_s21 = smov 128   ;;  %s529_s22 = smov 8  }
   0xd   :  { %34 = dma.hbm_to_vmem [thread:$0]  %s587_s1, 2048, %s29_s19, [#allocation6], %s528_s21, %s528_s21, %s529_s22  }
   0xe   :  { %s530_s25 = smov [#allocation2]   ;;  %s531_s27 = smov [#allocation7]  }
   0xf   :  { %s19_s26 = sshll.u32 %s530_s25, 4  ;;  %s42_s28 = sshll.u32 %s531_s27, 4  ;;  %s20_s26 = int_to_ptr.vmem [resolvable:$true] %s19_s26  ;;  %s43_s28 = int_to_ptr.vmem [resolvable:$true] %s42_s28 }
  0x10   :  { %s469_s29 = scalar_lea.vmem %s20_s26, 128  ;;  %p474_p6 = scmp.lt.s32.totalorder %s20_s26, %s20_s26 }
  0x11   :  { %p470_p5 = scmp.ne.s32.totalorder %s20_s26, %s469_s29  ;;  %p475_p7 = scmp.lt.s32.totalorder %s469_s29, %s469_s29 }
  0x13   :  { %p476_p8 = por %p475_p7, %p474_p6 }
  0x15   :  { %p477_p9 = pnand %p476_p8, %p470_p5 }
  0x17   :  { %480 = shalt.err (!%p477_p9)
}
  0x18   :  { %22 = dma.hbm_to_vmem [thread:$0]  %s586_s0, 128, %s20_s26, [#allocation3]  }
  0x19   :  { %s489_s7 = scalar_lea.vmem %s43_s28, 1024  ;;  %p494_p11 = scmp.lt.s32.totalorder %s43_s28, %s43_s28 }
  0x1a   :  { %p490_p10 = scmp.ne.s32.totalorder %s43_s28, %s489_s7  ;;  %p495_p12 = scmp.lt.s32.totalorder %s489_s7, %s489_s7 }
  0x1c   :  { %p496_p13 = por %p495_p12, %p494_p11 }
  0x1e   :  { %p497_p0 = pnand %p496_p13, %p490_p10 }
  0x20   :  { %500 = shalt.err (!%p497_p0)
}
  0x21   :  { %s532_s1 = smov 64   ;;  %s533_s8 = smov 4  }
  0x22   :  { %48 = dma.hbm_to_vmem [thread:$0]  %s589_s3, 1024, %s43_s28, [#allocation6], %s532_s1, %s532_s1, %s533_s8  }
  0x23   :  { %521 = dma.done.wait [#allocation3], 128  }
  0x24   :  { %522 = vsyncadd [#allocation3], 4294967168 }
  0x25   :  { %523 = dma.done.wait [#allocation6], 3072  }
  0x26   :  { %524 = vsyncadd [#allocation6], 4294964224  ;;  %v534_v0 = vmov 0   ;;  %v535_v1 = vmov 0.0   ;;  %v409_v2 = vld [vmem:[#allocation5 + $0x74] ss:$8 sps:$4 sm:$0xff]   ;;  %v81_v28 = vlaneseq }
  0x27   :  { %203 = vmatprep.mubr.bf16.mxu0 %v534_v0  ;;  %378 = vmatprep.subr.bf16.mxu1 %v535_v1  ;;  %v411_v3 = vld [vmem:[#allocation5 + $0x70] ss:$8 sps:$4 sm:$0xff]   ;;  %v412_v4 = vld [vmem:[#allocation5 + $0x64] ss:$8 sps:$4 sm:$0xff]   ;;  %v414_v5 = vld [vmem:[#allocation5 + $0x60] ss:$8 sps:$4 sm:$0xff]  }
  0x28   :  { %171 = vmatprep.subr.bf16.mxu0 %v409_v2  ;;  %v415_v6 = vld [vmem:[#allocation5 + $0x54] ss:$8 sps:$4 sm:$0xff]   ;;  %v417_v7 = vld [vmem:[#allocation5 + $0x50] ss:$8 sps:$4 sm:$0xff]   ;;  %v418_v8 = vld [vmem:[#allocation5 + $0x44] ss:$8 sps:$4 sm:$0xff]  }
  0x29   :  { %172 = vmatpush1.bf16.msra.mxu0 %v411_v3  ;;  %v420_v9 = vld [vmem:[#allocation5 + $0x40] ss:$8 sps:$4 sm:$0xff]   ;;  %v433_v10 = vld [vmem:[#allocation7 + $0x38] sm:$0xff]   ;;  %v434_v12 = vld [vmem:[#allocation7 + $0x30] sm:$0xff]   ;;  %vm536_vm0 = vmmov 0   ;;  %v82_v29 = vshrl.u32 %v81_v28, 7 }
  0x2a   :  { %173 = vmatprep.subr.bf16.mxu0 %v412_v4  ;;  %v421_v11 = vld [vmem:[#allocation5 + $0x34] ss:$8 sps:$4 sm:$0xff]   ;;  %379 = vmatpush3.bf16.msra.mxu1 %v433_v10  ;;  %v423_v13 = vld [vmem:[#allocation5 + $0x30] ss:$8 sps:$4 sm:$0xff]   ;;  %v424_v14 = vld [vmem:[#allocation5 + $0x24] ss:$8 sps:$4 sm:$0xff]  }
  0x2b   :  { %380 = vmatprep.subr.bf16.mxu1 %v535_v1  ;;  %v435_v15 = vld [vmem:[#allocation7 + $0x28] sm:$0xff]   ;;  %v427_v17 = vld [vmem:[#allocation5 + $0x14] ss:$8 sps:$4 sm:$0xff]   ;;  %v436_v18 = vld [vmem:[#allocation7 + $0x20] sm:$0xff]   ;;  %394 = vmatprep.mubr.msk.bf16.mxu1 %vm536_vm0, %v535_v1  ;;  %v83_v30 = vsub.s32 0, %v82_v29  ;;  %v87_v40 = vsub.s32 1, %v82_v29 }
  0x2c   :  { %v426_v16 = vld [vmem:[#allocation5 + $0x20] ss:$8 sps:$4 sm:$0xff]   ;;  %v429_v19 = vld [vmem:[#allocation5 + $0x10] ss:$8 sps:$4 sm:$0xff]   ;;  %v430_v20 = vld [vmem:[#allocation5 + $0x4] ss:$8 sps:$4 sm:$0xff]  }
  0x2d   :  { %174 = vmatpush1.bf16.msra.mxu0 %v414_v5  ;;  %v437_v21 = vld [vmem:[#allocation7 + $0x18] sm:$0xff]   ;;  %v432_v22 = vld [vmem:[#allocation5] ss:$8 sps:$4 sm:$0xff]   ;;  %v438_v24 = vld [vmem:[#allocation7 + $0x10] sm:$0xff]  }
  0x2e   :  { %175 = vmatprep.subr.bf16.mxu0 %v415_v6  ;;  %381 = vmatpush3.bf16.msra.mxu1 %v434_v12  ;;  %v61_v23 = vld [vmem:[#allocation2] sm:$0xff]  ;;  %v439_v26 = vld [vmem:[#allocation7 + $0x8] sm:$0xff]   ;;  %v440_v27 = vld [vmem:[#allocation7] sm:$0xff]  }
  0x2f   :  { %382 = vmatprep.subr.bf16.mxu1 %v535_v1  ;;  %v62_v25 = vpack.c.bf16 %v61_v23, %v61_v23  ;;  %v79_v31 = vld [vmem:[%s588_s2] sm:$0x3]  ;;  %s537_s2 = smov [#allocation8]  }
  0x30   :  { %v84_v32 = vrot.slane %v79_v31, %v83_v30  ;;  %v88_v41 = vrot.slane %v79_v31, %v87_v40  ;;  %v360_v42 = vld [vmem:[%s590_s4] ss:$0 sm:$0xff]  ;;  %s334_s13 = sshll.u32 %s537_s2, 4  ;;  %s335_s13 = int_to_ptr.vmem [resolvable:$true] %s334_s13 }
  0x31   :  { %176 = vmatpush1.bf16.msra.mxu0 %v417_v7  ;;  %s501_s14 = scalar_lea.vmem %s335_s13, 128  ;;  %p506_p2 = scmp.lt.s32.totalorder %s335_s13, %s335_s13 }
  0x32   :  { %177 = vmatprep.subr.bf16.mxu0 %v418_v8  ;;  %383 = vmatpush3.bf16.msra.mxu1 %v435_v15  ;;  %p502_p1 = scmp.ne.s32.totalorder %s335_s13, %s501_s14  ;;  %p507_p3 = scmp.lt.s32.totalorder %s501_s14, %s501_s14 }
  0x33   :  { %384 = vmatprep.subr.bf16.mxu1 %v535_v1 }
  0x34   :  { %p508_p4 = por %p507_p3, %p506_p2 }
  0x35   :  { %178 = vmatpush1.bf16.msra.mxu0 %v420_v9 }
  0x36   :  { %179 = vmatprep.subr.bf16.mxu0 %v421_v11  ;;  %385 = vmatpush3.bf16.msra.mxu1 %v436_v18  ;;  %p509_p5 = pnand %p508_p4, %p502_p1 }
  0x37   :  { %386 = vmatprep.subr.bf16.mxu1 %v535_v1 }
  0x39   :  { %180 = vmatpush1.bf16.msra.mxu0 %v423_v13 }
  0x3a   :  { %181 = vmatprep.subr.bf16.mxu0 %v424_v14  ;;  %387 = vmatpush3.bf16.msra.mxu1 %v437_v21 }
  0x3b   :  { %388 = vmatprep.subr.bf16.mxu1 %v535_v1 }
  0x3d   :  { %182 = vmatpush1.bf16.msra.mxu0 %v426_v16 }
  0x3e   :  { %183 = vmatprep.subr.bf16.mxu0 %v427_v17  ;;  %389 = vmatpush3.bf16.msra.mxu1 %v438_v24 }
  0x3f   :  { %390 = vmatprep.subr.bf16.mxu1 %v535_v1 }
  0x41   :  { %184 = vmatpush1.bf16.msra.mxu0 %v429_v19 }
  0x42   :  { %185 = vmatprep.subr.bf16.mxu0 %v430_v20  ;;  %391 = vmatpush3.bf16.msra.mxu1 %v439_v26 }
  0x43   :  { %392 = vmatprep.subr.bf16.mxu1 %v535_v1 }
  0x45   :  { %186 = vmatpush1.bf16.msra.mxu0 %v432_v22 }
  0x46   :  { %393 = vmatpush3.bf16.msra.mxu1 %v440_v27 }
  0x48   :  { %204 = vmatmul.mubr.bf16.vlgmr.msra.gmra.mxu0 %v62_v25 }
 0x108   :  { %v205_v33 = vpop.f32.mrf.mxu0 }
 0x109   :  { %v206_v34 = vadd.f32 %v205_v33, %v84_v32 }
 0x10a   :  { %v207_v35 = vpop.f32.mrf.mxu0 }
 0x10b   :  { %v212_v36 = vmax.f32 %v206_v34, 0.0  ;;  %v208_v44 = vadd.f32 %v207_v35, %v88_v41 }
 0x10c   :  { %v209_v37 = vpop.f32.mrf.mxu0 }
 0x10d   :  { %v213_v38 = vpack.c.bf16 %v212_v36, %v212_v36 }
 0x10e   :  { %v210_v39 = vpop.f32.mrf.mxu0 }
 0x10f   :  { %395 = vmatmul.mubr.bf16.vlgmr.msra.gmra.mxu1 %v213_v38 }
 0x1cf   :  { %v319_v43 = vpop.f32.mrf.mxu1 }
 0x1d0   :  { %v320_v45 = vadd.f32 %v360_v42, %v319_v43 }
 0x1d1   :  { %v396_v46 = vpop.f32.mrf.mxu1 }
 0x1d2   :  { %v325_v47 = vadd.f32 %v320_v45, %v208_v44 }
 0x1d3   :  { %v322_v48 = vpop.f32.mrf.mxu1 }
 0x1d4   :  { %v326_v49 = vmax.f32 %v325_v47, 0.0 }
 0x1d5   :  { %v397_v50 = vpop.f32.mrf.mxu1 }
 0x1d6   :  { %327 = vst [vmem:[#allocation8] sm:$0xff] %v326_v49 }
 0x1d7   :  { %512 = shalt.err (!%p509_p5)
}
 0x1d8   :  { %337 = dma.vmem_to_hbm [thread:$0]  %s335_s13, 128, %s591_s5, [#allocation4]  }
 0x1d9   :  { %525 = dma.done.wait [#allocation4], 128  }
 0x1da   :  { %526 = vsyncadd [#allocation4], 4294967168 }
 0x1db   :  { %341 = vsyncpa [#allocation3], 1 }
 0x1dc   :  { %342 = vsyncpa [#allocation6], 1 }
 0x1dd   :  { %343 = vsyncpa [#allocation4], 1 }

// kernel: tpu_custom_call.1
= control target key start
LH: loop header
LB: loop body
LE: loop exit
PB: predicated region body
PF: predicated region fallthrough
CT: control target
= control target key end

     0   :  { %10 = vsyncpa [#allocation3], 0  ;;  %s586_s0 = inlined_call_operand.hbm [shape: f32[8,128], index: 0, kind: input, shape index: {}]   ;;  %s587_s1 = inlined_call_operand.hbm [shape: bf16[128,256], index: 1, kind: input, shape index: {}]   ;;  %s588_s2 = inlined_call_operand.vmem [shape: f32[1,256], index: 2, kind: input, shape index: {}]   ;;  %s589_s3 = inlined_call_operand.hbm [shape: bf16[128,128], index: 3, kind: input, shape index: {}]   ;;  %s590_s4 = inlined_call_operand.vmem [shape: f32[1,128], index: 4, kind: input, shape index: {}]   ;;  %s591_s5 = inlined_call_operand.hbm [shape: f32[8,128], index: 5, kind: output, shape index: {}]  }
   0x1   :  { %11 = vsyncpa [#allocation6], 0 }
   0x2   :  { %12 = vsyncpa [#allocation4], 0  ;;  %s527_s18 = smov [#allocation5]  }
   0x3   :  { %s28_s19 = sshll.u32 %s527_s18, 4  ;;  %s29_s19 = int_to_ptr.vmem [resolvable:$true] %s28_s19 }
   0x4   :  { %s449_s20 = scalar_lea.vmem %s29_s19, 2048  ;;  %p454_p1 = scmp.lt.s32.totalorder %s29_s19, %s29_s19 }
   0x5   :  { %p450_p0 = scmp.ne.s32.totalorder %s29_s19, %s449_s20  ;;  %p455_p2 = scmp.lt.s32.totalorder %s449_s20, %s449_s20 }
   0x7   :  { %p456_p3 = por %p455_p2, %p454_p1 }
   0x9   :  { %p457_p4 = pnand %p456_p3, %p450_p0 }
   0xb   :  { %460 = shalt.err (!%p457_p4)
}
   0xc   :  { %s528_s21 = smov 128   ;;  %s529_s22 = smov 8  }
   0xd   :  { %34 = dma.hbm_to_vmem [thread:$0]  %s587_s1, 2048, %s29_s19, [#allocation6], %s528_s21, %s528_s21, %s529_s22  }
   0xe   :  { %s530_s25 = smov [#allocation2]   ;;  %s531_s27 = smov [#allocation7]  }
   0xf   :  { %s19_s26 = sshll.u32 %s530_s25, 4  ;;  %s42_s28 = sshll.u32 %s531_s27, 4  ;;  %s20_s26 = int_to_ptr.vmem [resolvable:$true] %s19_s26  ;;  %s43_s28 = int_to_ptr.vmem [resolvable:$true] %s42_s28 }
  0x10   :  { %s469_s29 = scalar_lea.vmem %s20_s26, 128  ;;  %p474_p6 = scmp.lt.s32.totalorder %s20_s26, %s20_s26 }
  0x11   :  { %p470_p5 = scmp.ne.s32.totalorder %s20_s26, %s469_s29  ;;  %p475_p7 = scmp.lt.s32.totalorder %s469_s29, %s469_s29 }
  0x13   :  { %p476_p8 = por %p475_p7, %p474_p6 }
  0x15   :  { %p477_p9 = pnand %p476_p8, %p470_p5 }
  0x17   :  { %480 = shalt.err (!%p477_p9)
}
  0x18   :  { %22 = dma.hbm_to_vmem [thread:$0]  %s586_s0, 128, %s20_s26, [#allocation3]  }
  0x19   :  { %s489_s7 = scalar_lea.vmem %s43_s28, 1024  ;;  %p494_p11 = scmp.lt.s32.totalorder %s43_s28, %s43_s28 }
  0x1a   :  { %p490_p10 = scmp.ne.s32.totalorder %s43_s28, %s489_s7  ;;  %p495_p12 = scmp.lt.s32.totalorder %s489_s7, %s489_s7 }
  0x1c   :  { %p496_p13 = por %p495_p12, %p494_p11 }
  0x1e   :  { %p497_p0 = pnand %p496_p13, %p490_p10 }
  0x20   :  { %500 = shalt.err (!%p497_p0)
}
  0x21   :  { %s532_s1 = smov 64   ;;  %s533_s8 = smov 4  }
  0x22   :  { %48 = dma.hbm_to_vmem [thread:$0]  %s589_s3, 1024, %s43_s28, [#allocation6], %s532_s1, %s532_s1, %s533_s8  }
  0x23   :  { %521 = dma.done.wait [#allocation3], 128  }
  0x24   :  { %522 = vsyncadd [#allocation3], 4294967168 }
  0x25   :  { %523 = dma.done.wait [#allocation6], 3072  }
  0x26   :  { %524 = vsyncadd [#allocation6], 4294964224  ;;  %v534_v0 = vmov 0   ;;  %v535_v1 = vmov 0.0   ;;  %v409_v2 = vld [vmem:[#allocation5 + $0x74] ss:$8 sps:$4 sm:$0xff]   ;;  %v81_v28 = vlaneseq }
  0x27   :  { %203 = vmatprep.mubr.bf16.mxu0 %v534_v0  ;;  %378 = vmatprep.subr.bf16.mxu1 %v535_v1  ;;  %v411_v3 = vld [vmem:[#allocation5 + $0x70] ss:$8 sps:$4 sm:$0xff]   ;;  %v412_v4 = vld [vmem:[#allocation5 + $0x64] ss:$8 sps:$4 sm:$0xff]   ;;  %v414_v5 = vld [vmem:[#allocation5 + $0x60] ss:$8 sps:$4 sm:$0xff]  }
  0x28   :  { %171 = vmatprep.subr.bf16.mxu0 %v409_v2  ;;  %v415_v6 = vld [vmem:[#allocation5 + $0x54] ss:$8 sps:$4 sm:$0xff]   ;;  %v417_v7 = vld [vmem:[#allocation5 + $0x50] ss:$8 sps:$4 sm:$0xff]   ;;  %v418_v8 = vld [vmem:[#allocation5 + $0x44] ss:$8 sps:$4 sm:$0xff]  }
  0x29   :  { %172 = vmatpush1.bf16.msra.mxu0 %v411_v3  ;;  %v420_v9 = vld [vmem:[#allocation5 + $0x40] ss:$8 sps:$4 sm:$0xff]   ;;  %v433_v10 = vld [vmem:[#allocation7 + $0x38] sm:$0xff]   ;;  %v434_v12 = vld [vmem:[#allocation7 + $0x30] sm:$0xff]   ;;  %vm536_vm0 = vmmov 0   ;;  %v82_v29 = vshrl.u32 %v81_v28, 7 }
  0x2a   :  { %173 = vmatprep.subr.bf16.mxu0 %v412_v4  ;;  %v421_v11 = vld [vmem:[#allocation5 + $0x34] ss:$8 sps:$4 sm:$0xff]   ;;  %379 = vmatpush3.bf16.msra.mxu1 %v433_v10  ;;  %v423_v13 = vld [vmem:[#allocation5 + $0x30] ss:$8 sps:$4 sm:$0xff]   ;;  %v424_v14 = vld [vmem:[#allocation5 + $0x24] ss:$8 sps:$4 sm:$0xff]  }
  0x2b   :  { %380 = vmatprep.subr.bf16.mxu1 %v535_v1  ;;  %v435_v15 = vld [vmem:[#allocation7 + $0x28] sm:$0xff]   ;;  %v427_v17 = vld [vmem:[#allocation5 + $0x14] ss:$8 sps:$4 sm:$0xff]   ;;  %v436_v18 = vld [vmem:[#allocation7 + $0x20] sm:$0xff]   ;;  %394 = vmatprep.mubr.msk.bf16.mxu1 %vm536_vm0, %v535_v1  ;;  %v83_v30 = vsub.s32 0, %v82_v29  ;;  %v87_v40 = vsub.s32 1, %v82_v29 }
  0x2c   :  { %v426_v16 = vld [vmem:[#allocation5 + $0x20] ss:$8 sps:$4 sm:$0xff]   ;;  %v429_v19 = vld [vmem:[#allocation5 + $0x10] ss:$8 sps:$4 sm:$0xff]   ;;  %v430_v20 = vld [vmem:[#allocation5 + $0x4] ss:$8 sps:$4 sm:$0xff]  }
  0x2d   :  { %174 = vmatpush1.bf16.msra.mxu0 %v414_v5  ;;  %v437_v21 = vld [vmem:[#allocation7 + $0x18] sm:$0xff]   ;;  %v432_v22 = vld [vmem:[#allocation5] ss:$8 sps:$4 sm:$0xff]   ;;  %v438_v24 = vld [vmem:[#allocation7 + $0x10] sm:$0xff]  }
  0x2e   :  { %175 = vmatprep.subr.bf16.mxu0 %v415_v6  ;;  %381 = vmatpush3.bf16.msra.mxu1 %v434_v12  ;;  %v61_v23 = vld [vmem:[#allocation2] sm:$0xff]  ;;  %v439_v26 = vld [vmem:[#allocation7 + $0x8] sm:$0xff]   ;;  %v440_v27 = vld [vmem:[#allocation7] sm:$0xff]  }
  0x2f   :  { %382 = vmatprep.subr.bf16.mxu1 %v535_v1  ;;  %v62_v25 = vpack.c.bf16 %v61_v23, %v61_v23  ;;  %v79_v31 = vld [vmem:[%s588_s2] sm:$0x3]  ;;  %s537_s2 = smov [#allocation8]  }
  0x30   :  { %v84_v32 = vrot.slane %v79_v31, %v83_v30  ;;  %v88_v41 = vrot.slane %v79_v31, %v87_v40  ;;  %v360_v42 = vld [vmem:[%s590_s4] ss:$0 sm:$0xff]  ;;  %s334_s13 = sshll.u32 %s537_s2, 4  ;;  %s335_s13 = int_to_ptr.vmem [resolvable:$true] %s334_s13 }
  0x31   :  { %176 = vmatpush1.bf16.msra.mxu0 %v417_v7  ;;  %s501_s14 = scalar_lea.vmem %s335_s13, 128  ;;  %p506_p2 = scmp.lt.s32.totalorder %s335_s13, %s335_s13 }
  0x32   :  { %177 = vmatprep.subr.bf16.mxu0 %v418_v8  ;;  %383 = vmatpush3.bf16.msra.mxu1 %v435_v15  ;;  %p502_p1 = scmp.ne.s32.totalorder %s335_s13, %s501_s14  ;;  %p507_p3 = scmp.lt.s32.totalorder %s501_s14, %s501_s14 }
  0x33   :  { %384 = vmatprep.subr.bf16.mxu1 %v535_v1 }
  0x34   :  { %p508_p4 = por %p507_p3, %p506_p2 }
  0x35   :  { %178 = vmatpush1.bf16.msra.mxu0 %v420_v9 }
  0x36   :  { %179 = vmatprep.subr.bf16.mxu0 %v421_v11  ;;  %385 = vmatpush3.bf16.msra.mxu1 %v436_v18  ;;  %p509_p5 = pnand %p508_p4, %p502_p1 }
  0x37   :  { %386 = vmatprep.subr.bf16.mxu1 %v535_v1 }
  0x39   :  { %180 = vmatpush1.bf16.msra.mxu0 %v423_v13 }
  0x3a   :  { %181 = vmatprep.subr.bf16.mxu0 %v424_v14  ;;  %387 = vmatpush3.bf16.msra.mxu1 %v437_v21 }
  0x3b   :  { %388 = vmatprep.subr.bf16.mxu1 %v535_v1 }
  0x3d   :  { %182 = vmatpush1.bf16.msra.mxu0 %v426_v16 }
  0x3e   :  { %183 = vmatprep.subr.bf16.mxu0 %v427_v17  ;;  %389 = vmatpush3.bf16.msra.mxu1 %v438_v24 }
  0x3f   :  { %390 = vmatprep.subr.bf16.mxu1 %v535_v1 }
  0x41   :  { %184 = vmatpush1.bf16.msra.mxu0 %v429_v19 }
  0x42   :  { %185 = vmatprep.subr.bf16.mxu0 %v430_v20  ;;  %391 = vmatpush3.bf16.msra.mxu1 %v439_v26 }
  0x43   :  { %392 = vmatprep.subr.bf16.mxu1 %v535_v1 }
  0x45   :  { %186 = vmatpush1.bf16.msra.mxu0 %v432_v22 }
  0x46   :  { %393 = vmatpush3.bf16.msra.mxu1 %v440_v27 }
  0x48   :  { %204 = vmatmul.mubr.bf16.vlgmr.msra.gmra.mxu0 %v62_v25 }
 0x108   :  { %v205_v33 = vpop.f32.mrf.mxu0 }
 0x109   :  { %v206_v34 = vadd.f32 %v205_v33, %v84_v32 }
 0x10a   :  { %v207_v35 = vpop.f32.mrf.mxu0 }
 0x10b   :  { %v212_v36 = vmax.f32 %v206_v34, 0.0  ;;  %v208_v44 = vadd.f32 %v207_v35, %v88_v41 }
 0x10c   :  { %v209_v37 = vpop.f32.mrf.mxu0 }
 0x10d   :  { %v213_v38 = vpack.c.bf16 %v212_v36, %v212_v36 }
 0x10e   :  { %v210_v39 = vpop.f32.mrf.mxu0 }
 0x10f   :  { %395 = vmatmul.mubr.bf16.vlgmr.msra.gmra.mxu1 %v213_v38 }
 0x1cf   :  { %v319_v43 = vpop.f32.mrf.mxu1 }
 0x1d0   :  { %v320_v45 = vadd.f32 %v360_v42, %v319_v43 }
 0x1d1   :  { %v396_v46 = vpop.f32.mrf.mxu1 }
 0x1d2   :  { %v325_v47 = vadd.f32 %v320_v45, %v208_v44 }
 0x1d3   :  { %v322_v48 = vpop.f32.mrf.mxu1 }
 0x1d4   :  { %v326_v49 = vmax.f32 %v325_v47, 0.0 }
 0x1d5   :  { %v397_v50 = vpop.f32.mrf.mxu1 }
 0x1d6   :  { %327 = vst [vmem:[#allocation8] sm:$0xff] %v326_v49 }
 0x1d7   :  { %512 = shalt.err (!%p509_p5)
}
 0x1d8   :  { %337 = dma.vmem_to_hbm [thread:$0]  %s335_s13, 128, %s591_s5, [#allocation4]  }
 0x1d9   :  { %525 = dma.done.wait [#allocation4], 128  }
 0x1da   :  { %526 = vsyncadd [#allocation4], 4294967168 }
 0x1db   :  { %341 = vsyncpa [#allocation3], 1 }
 0x1dc   :  { %342 = vsyncpa [#allocation6], 1 }
 0x1dd   :  { %343 = vsyncpa [#allocation4], 1 }

</bundles_post_ra>
